<compile_context>
chip_gen: v7x
topology: tpu7x:2x2x1
jax: 0.10.0
libtpu: 0.0.40
codegen_flags: <defaults>
</compile_context>

<pallas_src>
import jax
import jax.numpy as jnp
from jax.experimental import pallas as pl
from jax.experimental.pallas import tpu as pltpu


def _round_up(x, m):
    return ((x + m - 1) // m) * m


def _mm_bias_sigmoid_kernel(x1_ref, x2_ref, inp_ref, t2_ref):
    """t2 = sigmoid(x1 @ x2 + inp), accumulated over the k grid axis.

    The f32 output tile itself is the accumulator (its BlockSpec index is
    constant along k, so the tile stays resident in VMEM) -> no scratch.
    `inp` is folded into the k==0 init, so the epilogue is just sigmoid.
    """
    k = pl.program_id(2)

    @pl.when(k == 0)
    def _():
        t2_ref[...] = inp_ref[...].astype(jnp.float32)

    t2_ref[...] += jnp.dot(
        x1_ref[...], x2_ref[...], preferred_element_type=jnp.float32
    )

    @pl.when(k == pl.num_programs(2) - 1)
    def _():
        t2_ref[...] = jax.nn.sigmoid(t2_ref[...])


def _fused_mm_bias_sigmoid(x1, x2, inp, *, mxu_dtype=jnp.bfloat16,
                           tm_pref=256, tn_pref=512, tk_pref=512):
    M, K = x1.shape
    K2, N = x2.shape
    assert K2 == K, "inner dims must match"
    assert inp.shape == (M, N)

    # MXU-filling tiles at production sizes; (8,128)-aligned single blocks at
    # small sizes.  Large non-divisible dims are padded up to the tile
    # multiple (never a full-dimension block).
    tm = tm_pref if M >= tm_pref else _round_up(M, 8)
    tn = tn_pref if N >= tn_pref else _round_up(N, 128)
    tk = tk_pref if K >= tk_pref else _round_up(K, 128)
    Mp, Np, Kp = _round_up(M, tm), _round_up(N, tn), _round_up(K, tk)

    # bf16 operands -> full-rate MXU on v6e/v7x and half the x1/x2 DMA bytes.
    # Accumulation / output stay f32.
    x1p = x1.astype(mxu_dtype)
    x2p = x2.astype(mxu_dtype)
    inpp = inp
    if (Mp, Kp) != (M, K):
        x1p = jnp.pad(x1p, ((0, Mp - M), (0, Kp - K)))
    if (Kp, Np) != (K, N):
        x2p = jnp.pad(x2p, ((0, Kp - K), (0, Np - N)))
    if (Mp, Np) != (M, N):
        inpp = jnp.pad(inpp, ((0, Mp - M), (0, Np - N)))

    grid = (Mp // tm, Np // tn, Kp // tk)

    # Double-buffered VMEM footprint per grid step (inputs + resident output).
    est = (2 * tm * tk * x1p.dtype.itemsize
           + 2 * tk * tn * x2p.dtype.itemsize
           + 2 * tm * tn * inpp.dtype.itemsize
           + 2 * tm * tn * 4)
    vmem_limit = int(min(64 << 20, max(16 << 20, 4 * est)))

    t2_full = pl.pallas_call(
        _mm_bias_sigmoid_kernel,
        # Output dtype pinned to f32 (correctness guard now that operands are
        # bf16).  Switch deliberately to bf16 here to halve writeback if that
        # precision is acceptable downstream.
        out_shape=jax.ShapeDtypeStruct((Mp, Np), jnp.float32),
        grid_spec=pltpu.PrefetchScalarGridSpec(
            num_scalar_prefetch=0,
            grid=grid,
            in_specs=[
                pl.BlockSpec((tm, tk), lambda i, j, k: (i, k)),   # x1 (bf16)
                pl.BlockSpec((tk, tn), lambda i, j, k: (k, j)),   # x2 (bf16)
                # inp: block index constant along k -> fetched once per (i,j)
                # tile.  pipeline_mode=pl.Buffered(1) would shave one
                # (tm, tn) f32 buffer if VMEM ever gets tight on v7x.
                pl.BlockSpec((tm, tn), lambda i, j, k: (i, j)),   # inp (f32)
            ],
            out_specs=pl.BlockSpec((tm, tn), lambda i, j, k: (i, j)),
        ),
        compiler_params=pltpu.CompilerParams(
            dimension_semantics=("parallel", "parallel", "arbitrary"),
            vmem_limit_bytes=vmem_limit,
        ),
    )(x1p, x2p, inpp)

    return t2_full[:M, :N]


def model_forward(x1, x2, inp):
    M, K = x1.shape
    _, N = x2.shape
    assert N == K, "repaired contract: N == K so that t2 * x1 is elementwise-valid"

    t2 = _fused_mm_bias_sigmoid(x1, x2, inp)

    # Cheap glue (matches torch semantics).  t3 = t2 * x1 is never needed in
    # full: only its [0:3, 2] column is consumed.
    t5 = (t2[0:3, 2] * x1[0:3, 2])[:, None]   # == t3[0:3, 2].unsqueeze(1)
    t6 = t2[:4, :]                            # torch-style clamped row slice
    return t5, t6


if __name__ == "__main__":
    key = jax.random.PRNGKey(0)
    k1, k2, k3 = jax.random.split(key, 3)

    M, K, N = 4, 8, 8  # repaired N == K so the forward is well-defined
    x1 = jax.random.normal(k1, (M, K), dtype=jnp.float32)
    x2 = jax.random.normal(k2, (K, N), dtype=jnp.float32)
    inp = jax.random.normal(k3, (M, N), dtype=jnp.float32)

    fwd = jax.jit(model_forward)
    t5, t6 = fwd(x1, x2, inp)
    jax.block_until_ready((t5, t6))

    # Reference 1: emulate the kernel's deliberate bf16-operand / f32-accum
    # matmul (tight tolerance).
    x1_bf = x1.astype(jnp.bfloat16).astype(jnp.float32)
    x2_bf = x2.astype(jnp.bfloat16).astype(jnp.float32)
    t2_ref = jax.nn.sigmoid(x1_bf @ x2_bf + inp)
    t5_ref = (t2_ref[0:3, 2] * x1[0:3, 2])[:, None]
    t6_ref = t2_ref[:4, :]
    assert t5.shape == (3, 1) and t6.shape == (4, N)
    assert jnp.allclose(t5, t5_ref, atol=1e-4, rtol=1e-4), "t5 mismatch (bf16 ref)"
    assert jnp.allclose(t6, t6_ref, atol=1e-4, rtol=1e-4), "t6 mismatch (bf16 ref)"

    # Reference 2: pure-f32 torch-equivalent reference (loose tolerance — the
    # only difference is the intentional bf16 operand cast for the MXU).
    t2_f32 = jax.nn.sigmoid(x1 @ x2 + inp)
    assert jnp.allclose(t6, t2_f32[:4, :], atol=3e-2), "t6 drifted from f32 ref"
    assert jnp.allclose(t5, (t2_f32[0:3, 2] * x1[0:3, 2])[:, None], atol=3e-2), \
        "t5 drifted from f32 ref"

    print("KERNEL_OK")
</pallas_src>

<mosaic_0001>
module attributes {stable_mosaic.version = 11 : i64} {
  func.func @_mm_bias_sigmoid_kernel(%arg0: i32, %arg1: i32, %arg2: i32, %arg3: memref<8x128xbf16, #tpu.memory_space<vmem>>, %arg4: memref<128x128xbf16, #tpu.memory_space<vmem>>, %arg5: memref<8x128xf32, #tpu.memory_space<vmem>>, %arg6: memref<8x128xf32, #tpu.memory_space<vmem>>) attributes {dimension_semantics = [#tpu.dimension_semantics<parallel>, #tpu.dimension_semantics<parallel>, #tpu.dimension_semantics<arbitrary>], iteration_bounds = array<i64: 1, 1, 1>, scalar_prefetch = 0 : i64, scratch_operands = 0 : i64, tpu.core_type = #tpu.core_type<tc>, window_params = [{transform_indices = @transform_0, window_bounds = array<i64: 8, 128>}, {transform_indices = @transform_1, window_bounds = array<i64: 128, 128>}, {transform_indices = @transform_2, window_bounds = array<i64: 8, 128>}, {transform_indices = @transform_3, window_bounds = array<i64: 8, 128>}]} {
    %c0_i32 = arith.constant 0 : i32
    %0 = arith.cmpi eq, %arg2, %c0_i32 : i32
    %1 = arith.extui %0 : i1 to i32
    %c0_i32_0 = arith.constant 0 : i32
    %2 = arith.cmpi ne, %1, %c0_i32_0 : i32
    scf.if %2 {
      %c0_10 = arith.constant 0 : index
      %c0_11 = arith.constant 0 : index
      %12 = vector.load %arg5[%c0_10, %c0_11] : memref<8x128xf32, #tpu.memory_space<vmem>>, vector<8x128xf32>
      %c0_12 = arith.constant 0 : index
      %c0_13 = arith.constant 0 : index
      %13 = vector.load %arg6[%c0_12, %c0_13] : memref<8x128xf32, #tpu.memory_space<vmem>>, vector<8x128xf32>
      tpu.vector_store %arg6[%c0_12, %c0_13], %12 {strides = array<i32>} : memref<8x128xf32, #tpu.memory_space<vmem>>, vector<8x128xf32>,
    } else {
    }
    %c0 = arith.constant 0 : index
    %c0_1 = arith.constant 0 : index
    %3 = vector.load %arg6[%c0, %c0_1] : memref<8x128xf32, #tpu.memory_space<vmem>>, vector<8x128xf32>
    %c0_2 = arith.constant 0 : index
    %c0_3 = arith.constant 0 : index
    %4 = vector.load %arg3[%c0_2, %c0_3] : memref<8x128xbf16, #tpu.memory_space<vmem>>, vector<8x128xbf16>
    %c0_4 = arith.constant 0 : index
    %c0_5 = arith.constant 0 : index
    %5 = vector.load %arg4[%c0_4, %c0_5] : memref<128x128xbf16, #tpu.memory_space<vmem>>, vector<128x128xbf16>
    %cst = arith.constant dense<0.000000e+00> : vector<8x128xf32>
    %6 = tpu.matmul %4, %5, %cst {dimension_numbers = #tpu.dot_dimension_numbers<[1], [0], [0], [1], [0, 0, 1, 1], [], []>} : vector<8x128xbf16>, vector<128x128xbf16>, vector<8x128xf32> -> vector<8x128xf32>
    %7 = arith.addf %3, %6 : vector<8x128xf32>
    %c0_6 = arith.constant 0 : index
    %c0_7 = arith.constant 0 : index
    %8 = vector.load %arg6[%c0_6, %c0_7] : memref<8x128xf32, #tpu.memory_space<vmem>>, vector<8x128xf32>
    tpu.vector_store %arg6[%c0_6, %c0_7], %7 {strides = array<i32>} : memref<8x128xf32, #tpu.memory_space<vmem>>, vector<8x128xf32>,
    %c0_i32_8 = arith.constant 0 : i32
    %9 = arith.cmpi eq, %arg2, %c0_i32_8 : i32
    %10 = arith.extui %9 : i1 to i32
    %c0_i32_9 = arith.constant 0 : i32
    %11 = arith.cmpi ne, %10, %c0_i32_9 : i32
    scf.if %11 {
      %c0_10 = arith.constant 0 : index
      %c0_11 = arith.constant 0 : index
      %12 = vector.load %arg6[%c0_10, %c0_11] : memref<8x128xf32, #tpu.memory_space<vmem>>, vector<8x128xf32>
      %13 = arith.negf %12 : vector<8x128xf32>
      %14 = math.exp %13 : vector<8x128xf32>
      %cst_12 = arith.constant 1.000000e+00 : f32
      %15 = vector.broadcast %cst_12 : f32 to vector<8x128xf32>
      %16 = arith.addf %15, %14 : vector<8x128xf32>
      %17 = arith.divf %15, %16 : vector<8x128xf32>
      %c0_13 = arith.constant 0 : index
      %c0_14 = arith.constant 0 : index
      %18 = vector.load %arg6[%c0_13, %c0_14] : memref<8x128xf32, #tpu.memory_space<vmem>>, vector<8x128xf32>
      tpu.vector_store %arg6[%c0_13, %c0_14], %17 {strides = array<i32>} : memref<8x128xf32, #tpu.memory_space<vmem>>, vector<8x128xf32>,
    } else {
    }
    return
  }
  func.func @transform_0(%arg0: i32, %arg1: i32, %arg2: i32) -> (i32, i32) {
    %c0_i32 = arith.constant 0 : i32
    return %arg0, %arg2 : i32, i32
  }
  func.func @transform_1(%arg0: i32, %arg1: i32, %arg2: i32) -> (i32, i32) {
    %c0_i32 = arith.constant 0 : i32
    return %arg2, %arg1 : i32, i32
  }
  func.func @transform_2(%arg0: i32, %arg1: i32, %arg2: i32) -> (i32, i32) {
    %c0_i32 = arith.constant 0 : i32
    return %arg0, %arg1 : i32, i32
  }
  func.func @transform_3(%arg0: i32, %arg1: i32, %arg2: i32) -> (i32, i32) {
    %c0_i32 = arith.constant 0 : i32
    return %arg0, %arg1 : i32, i32
  }
}

</mosaic_0001>

<bundles_post_ra>
// kernel: model_forward.1
= control target key start
LH: loop header
LB: loop body
LE: loop exit
PB: predicated region body
PF: predicated region fallthrough
CT: control target
= control target key end

     0   :  { %v196_v0 = vmov 0.0   ;;  %vm197_vm0 = vmmov 0   ;;  %s251_s1 = inlined_call_operand.vmem [shape: bf16[128,128], index: 1, kind: input, shape index: {}]   ;;  %s252_s0 = inlined_call_operand.vmem [shape: bf16[8,128], index: 0, kind: input, shape index: {}]   ;;  %s253_s2 = inlined_call_operand.vmem [shape: f32[8,128], index: 2, kind: input, shape index: {}]   ;;  %s254_s3 = inlined_call_operand.vmem [shape: f32[8,128], index: 3, kind: output, shape index: {}]  }
   0x1   :  { %162 = vmatprep.subr.bf16.mxu0 %v196_v0  ;;  %v184_v1 = vld [vmem:[%s251_s1] sm:$0xff]   ;;  %178 = vmatprep.mubr.msk.bf16.mxu0 %vm197_vm0, %v196_v0  ;;  %v185_v2 = vld [vmem:[%s251_s1 + $0x8] sm:$0xff]   ;;  %v186_v3 = vld [vmem:[%s251_s1 + $0x10] sm:$0xff]  }
   0x2   :  { %163 = vmatpush3.bf16.msra.mxu0 %v184_v1  ;;  %v187_v4 = vld [vmem:[%s251_s1 + $0x18] sm:$0xff]   ;;  %v188_v5 = vld [vmem:[%s251_s1 + $0x20] sm:$0xff]   ;;  %v189_v6 = vld [vmem:[%s251_s1 + $0x28] sm:$0xff]  }
   0x3   :  { %164 = vmatprep.subr.bf16.mxu0 %v196_v0  ;;  %v190_v7 = vld [vmem:[%s251_s1 + $0x30] sm:$0xff]   ;;  %v191_v8 = vld [vmem:[%s251_s1 + $0x38] sm:$0xff]   ;;  %v22_v9 = vld [vmem:[%s252_s0] sm:$0xf] }
   0x4   :  { %v19_v10 = vld [vmem:[%s253_s2] sm:$0xff] }
   0x6   :  { %165 = vmatpush3.bf16.msra.mxu0 %v185_v2 }
   0x7   :  { %166 = vmatprep.subr.bf16.mxu0 %v196_v0 }
   0xa   :  { %167 = vmatpush3.bf16.msra.mxu0 %v186_v3 }
   0xb   :  { %168 = vmatprep.subr.bf16.mxu0 %v196_v0 }
   0xe   :  { %169 = vmatpush3.bf16.msra.mxu0 %v187_v4 }
   0xf   :  { %170 = vmatprep.subr.bf16.mxu0 %v196_v0 }
  0x12   :  { %171 = vmatpush3.bf16.msra.mxu0 %v188_v5 }
  0x13   :  { %172 = vmatprep.subr.bf16.mxu0 %v196_v0 }
  0x16   :  { %173 = vmatpush3.bf16.msra.mxu0 %v189_v6 }
  0x17   :  { %174 = vmatprep.subr.bf16.mxu0 %v196_v0 }
  0x1a   :  { %175 = vmatpush3.bf16.msra.mxu0 %v190_v7 }
  0x1b   :  { %176 = vmatprep.subr.bf16.mxu0 %v196_v0 }
  0x1e   :  { %177 = vmatpush3.bf16.msra.mxu0 %v191_v8 }
  0x21   :  { %179 = vmatmul.mubr.bf16.vlgmr.msra.gmra.mrb[0].mxu0 %v22_v9 }
  0xf4   :  { %v121_v11 = vpop.f32.mrb[0].mxu0 }
  0xf5   :  { %v127_v12 = vadd.f32 %v121_v11, %v19_v10  ;;  %v180_v13 = vpop.f32.mrb[1].mxu0 }
  0xf6   :  { %v124_v14 = vpop.f32.mrb[2].mxu0 }
  0xf7   :  { %v152_v15 = vmul.f32 -1.442695, %v127_v12  ;;  %v181_v16 = vpop.f32.mrb[3].mxu0 }
  0xf9   :  { %192 = vpow2.f32 %v152_v15 }
 0x103   :  { %v193_v17 = vpop.eup %192 }
 0x104   :  { %v136_v18 = vadd.f32 1.0, %v193_v17 }
 0x106   :  { %194 = vrcp.f32 %v136_v18 }
 0x110   :  { %v195_v19 = vpop.eup %194 }
 0x111   :  { %139 = vst [vmem:[%s254_s3] sm:$0xff] %v195_v19 }

</bundles_post_ra>
